<compile_context>
chip_gen: v7x
topology: tpu7x:2x2x1
jax: 0.10.0
libtpu: 0.0.40
codegen_flags: <defaults>
</compile_context>

<pallas_src>
import jax
import jax.numpy as jnp
from jax.experimental import pallas as pl
from jax.experimental.pallas import tpu as pltpu


def _head_kernel(x_ref, w1_ref, b1_ref, w2_ref, b2_ref, o_ref):
    # First Linear on the MXU: bf16 x bf16 -> f32 accumulate.
    h = jnp.dot(x_ref[...], w1_ref[...], preferred_element_type=jnp.float32)
    # Bias add + ReLU in f32 on the VPU.
    h = jnp.maximum(h + b1_ref[...], 0.0)
    # Second Linear: cast activations to bf16 right before the dot.
    y = jnp.dot(h.astype(w2_ref.dtype), w2_ref[...],
                preferred_element_type=jnp.float32)
    o_ref[...] = (y + b2_ref[...]).astype(o_ref.dtype)


def _round_up(n, m):
    return ((n + m - 1) // m) * m


def head_simclr_forward(x, w1, b1, w2, b2, *, tb=512,
                        compute_dtype=jnp.bfloat16):
    """Fused MLP head: relu(x @ w1 + b1) @ w2 + b2.

    x:  (B, 512)
    w1: (512, 512)      b1: (1, 512)
    w2: (512, out_dim)  b2: (1, out_dim)
    returns (B, out_dim) in x.dtype
    """
    B, d_in = x.shape
    d_hidden = w1.shape[1]
    d_out = w2.shape[1]
    out_dtype = x.dtype

    # bf16 tiles pack 16 rows per sublane group -> row tile must be a
    # multiple of 16 (also satisfies the f32 requirement of 8).
    min_rows = 16

    # Batch tile: as large as requested but never larger than the padded
    # batch; if the batch is big enough, keep at least 2 grid steps so the
    # "parallel" axis can feed both TensorCores on v7x.
    tb_eff = min(tb, _round_up(B, min_rows))
    if B >= 2 * min_rows and _round_up(B, tb_eff) // tb_eff < 2:
        tb_eff = _round_up(pl.cdiv(B, 2), min_rows)

    padded_B = _round_up(B, tb_eff)
    grid = (padded_B // tb_eff,)

    # Cast operands for the MXU; pad batch to the tile (zero rows are inert).
    xc = x.astype(compute_dtype)
    if padded_B != B:
        xc = jnp.pad(xc, ((0, padded_B - B), (0, 0)))
    w1c = w1.astype(compute_dtype)
    w2c = w2.astype(compute_dtype)
    b1f = b1.astype(jnp.float32).reshape(1, d_hidden)
    b2f = b2.astype(jnp.float32).reshape(1, d_out)

    y = pl.pallas_call(
        _head_kernel,
        out_shape=jax.ShapeDtypeStruct((padded_B, d_out), out_dtype),
        grid_spec=pltpu.PrefetchScalarGridSpec(
            num_scalar_prefetch=0,
            grid=grid,
            in_specs=[
                pl.BlockSpec((tb_eff, d_in), lambda i: (i, 0)),        # x tile
                pl.BlockSpec((d_in, d_hidden), lambda i: (0, 0)),      # W1 (resident)
                pl.BlockSpec((1, d_hidden), lambda i: (0, 0)),         # b1
                pl.BlockSpec((d_hidden, d_out), lambda i: (0, 0)),     # W2 (resident)
                pl.BlockSpec((1, d_out), lambda i: (0, 0)),            # b2
            ],
            out_specs=pl.BlockSpec((tb_eff, d_out), lambda i: (i, 0)),
        ),
        compiler_params=pltpu.CompilerParams(
            dimension_semantics=("parallel",)),
    )(xc, w1c, b1f, w2c, b2f)

    if padded_B != B:
        y = y[:B]
    return y


def init_params(key, out_dim, dtype=jnp.float32):
    """Deterministic synthetic parameters (shapes match the nn.Linear layers)."""
    k1, k2, k3, k4 = jax.random.split(key, 4)
    d = 512
    s = 1.0 / jnp.sqrt(d)
    w1 = jax.random.uniform(k1, (d, d), dtype, minval=-s, maxval=s)        # = W_torch.T
    b1 = jax.random.uniform(k2, (1, d), dtype, minval=-s, maxval=s)
    w2 = jax.random.uniform(k3, (d, out_dim), dtype, minval=-s, maxval=s)  # = W_torch.T
    b2 = jax.random.uniform(k4, (1, out_dim), dtype, minval=-s, maxval=s)
    return w1, b1, w2, b2


def _reference(x, w1, b1, w2, b2, compute_dtype=jnp.bfloat16):
    # Same math / same bf16 operand casts as the kernel (f32 accumulation).
    xc = x.astype(compute_dtype)
    h = jnp.dot(xc, w1.astype(compute_dtype),
                preferred_element_type=jnp.float32)
    h = jnp.maximum(h + b1.astype(jnp.float32), 0.0)
    y = jnp.dot(h.astype(compute_dtype), w2.astype(compute_dtype),
                preferred_element_type=jnp.float32)
    return (y + b2.astype(jnp.float32)).astype(x.dtype)


if __name__ == "__main__":
    key = jax.random.PRNGKey(0)
    kx, kx2, kp = jax.random.split(key, 3)

    out_dim = 128  # projection dimension g(z)
    w1, b1, w2, b2 = init_params(kp, out_dim)

    # Small batch (pads 8 -> 16, single grid step).
    B = 8
    x = jax.random.normal(kx, (B, 512), jnp.float32)
    y = jax.block_until_ready(head_simclr_forward(x, w1, b1, w2, b2))
    assert y.shape == (B, out_dim)
    y_ref = _reference(x, w1, b1, w2, b2)
    assert jnp.allclose(y, y_ref, atol=2e-2, rtol=2e-2)

    # Non-divisible batch exercising padding + a multi-step parallel grid.
    B2 = 48
    x2 = jax.random.normal(kx2, (B2, 512), jnp.float32)
    y2 = jax.block_until_ready(head_simclr_forward(x2, w1, b1, w2, b2))
    assert y2.shape == (B2, out_dim)
    y2_ref = _reference(x2, w1, b1, w2, b2)
    assert jnp.allclose(y2, y2_ref, atol=2e-2, rtol=2e-2)

    print("KERNEL_OK")
</pallas_src>

<mosaic_0001>
module attributes {stable_mosaic.version = 11 : i64} {
  func.func @_head_kernel(%arg0: i32, %arg1: memref<16x512xbf16, #tpu.memory_space<vmem>>, %arg2: memref<512x512xbf16, #tpu.memory_space<vmem>>, %arg3: memref<1x512xf32, #tpu.memory_space<vmem>>, %arg4: memref<512x128xbf16, #tpu.memory_space<vmem>>, %arg5: memref<1x128xf32, #tpu.memory_space<vmem>>, %arg6: memref<16x128xf32, #tpu.memory_space<vmem>>) attributes {dimension_semantics = [#tpu.dimension_semantics<parallel>], iteration_bounds = array<i64: 1>, scalar_prefetch = 0 : i64, scratch_operands = 0 : i64, tpu.core_type = #tpu.core_type<tc>, window_params = [{transform_indices = @transform_0, window_bounds = array<i64: 16, 512>}, {pipeline_mode = #tpu.pipeline_mode<synchronous>, transform_indices = @transform_1, window_bounds = array<i64: 512, 512>}, {pipeline_mode = #tpu.pipeline_mode<synchronous>, transform_indices = @transform_2, window_bounds = array<i64: 1, 512>}, {pipeline_mode = #tpu.pipeline_mode<synchronous>, transform_indices = @transform_3, window_bounds = array<i64: 512, 128>}, {pipeline_mode = #tpu.pipeline_mode<synchronous>, transform_indices = @transform_4, window_bounds = array<i64: 1, 128>}, {transform_indices = @transform_5, window_bounds = array<i64: 16, 128>}]} {
    %c0 = arith.constant 0 : index
    %c0_0 = arith.constant 0 : index
    %0 = vector.load %arg1[%c0, %c0_0] : memref<16x512xbf16, #tpu.memory_space<vmem>>, vector<16x512xbf16>
    %c0_1 = arith.constant 0 : index
    %c0_2 = arith.constant 0 : index
    %1 = vector.load %arg2[%c0_1, %c0_2] : memref<512x512xbf16, #tpu.memory_space<vmem>>, vector<512x512xbf16>
    %cst = arith.constant dense<0.000000e+00> : vector<16x512xf32>
    %2 = tpu.matmul %0, %1, %cst {dimension_numbers = #tpu.dot_dimension_numbers<[1], [0], [0], [1], [0, 0, 1, 1], [], []>} : vector<16x512xbf16>, vector<512x512xbf16>, vector<16x512xf32> -> vector<16x512xf32>
    %c0_3 = arith.constant 0 : index
    %c0_4 = arith.constant 0 : index
    %3 = vector.load %arg3[%c0_3, %c0_4] : memref<1x512xf32, #tpu.memory_space<vmem>>, vector<1x512xf32>
    %4 = vector.broadcast %3 : vector<1x512xf32> to vector<16x512xf32>
    %5 = arith.addf %2, %4 : vector<16x512xf32>
    %cst_5 = arith.constant 0.000000e+00 : f32
    %6 = vector.broadcast %cst_5 : f32 to vector<16x512xf32>
    %7 = arith.maximumf %5, %6 : vector<16x512xf32>
    %8 = arith.truncf %7 : vector<16x512xf32> to vector<16x512xbf16>
    %c0_6 = arith.constant 0 : index
    %c0_7 = arith.constant 0 : index
    %9 = vector.load %arg4[%c0_6, %c0_7] : memref<512x128xbf16, #tpu.memory_space<vmem>>, vector<512x128xbf16>
    %cst_8 = arith.constant dense<0.000000e+00> : vector<16x128xf32>
    %10 = tpu.matmul %8, %9, %cst_8 {dimension_numbers = #tpu.dot_dimension_numbers<[1], [0], [0], [1], [0, 0, 1, 1], [], []>} : vector<16x512xbf16>, vector<512x128xbf16>, vector<16x128xf32> -> vector<16x128xf32>
    %c0_9 = arith.constant 0 : index
    %c0_10 = arith.constant 0 : index
    %11 = vector.load %arg5[%c0_9, %c0_10] : memref<1x128xf32, #tpu.memory_space<vmem>>, vector<1x128xf32>
    %12 = vector.broadcast %11 : vector<1x128xf32> to vector<16x128xf32>
    %13 = arith.addf %10, %12 : vector<16x128xf32>
    %c0_11 = arith.constant 0 : index
    %c0_12 = arith.constant 0 : index
    %14 = vector.load %arg6[%c0_11, %c0_12] : memref<16x128xf32, #tpu.memory_space<vmem>>, vector<16x128xf32>
    tpu.vector_store %arg6[%c0_11, %c0_12], %13 {strides = array<i32>} : memref<16x128xf32, #tpu.memory_space<vmem>>, vector<16x128xf32>,
    return
  }
  func.func @transform_0(%arg0: i32) -> (i32, i32) {
    %c0_i32 = arith.constant 0 : i32
    %c0_i32_0 = arith.constant 0 : i32
    return %arg0, %c0_i32 : i32, i32
  }
  func.func @transform_1(%arg0: i32) -> (i32, i32) {
    %c0_i32 = arith.constant 0 : i32
    %c0_i32_0 = arith.constant 0 : i32
    %c0_i32_1 = arith.constant 0 : i32
    return %c0_i32, %c0_i32_0 : i32, i32
  }
  func.func @transform_2(%arg0: i32) -> (i32, i32) {
    %c0_i32 = arith.constant 0 : i32
    %c0_i32_0 = arith.constant 0 : i32
    %c0_i32_1 = arith.constant 0 : i32
    return %c0_i32, %c0_i32_0 : i32, i32
  }
  func.func @transform_3(%arg0: i32) -> (i32, i32) {
    %c0_i32 = arith.constant 0 : i32
    %c0_i32_0 = arith.constant 0 : i32
    %c0_i32_1 = arith.constant 0 : i32
    return %c0_i32, %c0_i32_0 : i32, i32
  }
  func.func @transform_4(%arg0: i32) -> (i32, i32) {
    %c0_i32 = arith.constant 0 : i32
    %c0_i32_0 = arith.constant 0 : i32
    %c0_i32_1 = arith.constant 0 : i32
    return %c0_i32, %c0_i32_0 : i32, i32
  }
  func.func @transform_5(%arg0: i32) -> (i32, i32) {
    %c0_i32 = arith.constant 0 : i32
    %c0_i32_0 = arith.constant 0 : i32
    return %arg0, %c0_i32 : i32, i32
  }
}

</mosaic_0001>

<bundles_post_ra>
// kernel: tpu_custom_call.1
= control target key start
LH: loop header
LB: loop body
LE: loop exit
PB: predicated region body
PF: predicated region fallthrough
CT: control target
= control target key end

     0   :  { %10 = vsyncpa [#allocation3], 0  ;;  %s2086_s0 = inlined_call_operand.hbm [shape: bf16[16,512], index: 0, kind: input, shape index: {}]   ;;  %s2087_s1 = inlined_call_operand.hbm [shape: bf16[512,512], index: 1, kind: input, shape index: {}]   ;;  %s2088_s2 = inlined_call_operand.vmem [shape: f32[1,512], index: 2, kind: input, shape index: {}]   ;;  %s2089_s3 = inlined_call_operand.hbm [shape: bf16[512,128], index: 3, kind: input, shape index: {}]   ;;  %s2090_s4 = inlined_call_operand.vmem [shape: f32[1,128], index: 4, kind: input, shape index: {}]   ;;  %s2091_s5 = inlined_call_operand.hbm [shape: f32[16,128], index: 5, kind: output, shape index: {}]  }
   0x1   :  { %11 = vsyncpa [#allocation6], 0 }
   0x2   :  { %12 = vsyncpa [#allocation4], 0  ;;  %s1985_s18 = smov [#allocation5]   ;;  %s1986_s20 = smov [#allocation2]  }
   0x3   :  { %s30_s19 = sshll.u32 %s1985_s18, 4  ;;  %s18_s21 = sshll.u32 %s1986_s20, 4  ;;  %s31_s19 = int_to_ptr.vmem [resolvable:$true] %s30_s19  ;;  %s2025_s21 = int_to_ptr.vmem [resolvable:$true] %s18_s21 }
   0x4   :  { %s1891_s24 = scalar_lea.hbm %s2087_s1, 16384 }
   0x5   :  { %p1892_p0 = scmp.ne.s32.totalorder %s2087_s1, %s1891_s24  ;;  %p1895_p1 = scmp.lt.u32.totalorder %s1891_s24, %s2087_s1 }
   0x7   :  { %p1897_p2 = pnand %p1895_p1, %p1892_p0 }
   0x9   :  { %1900 = shalt.err (!%p1897_p2)
}
   0xa   :  { %s1901_s29 = scalar_lea.vmem %s31_s19, 16384  ;;  %p1906_p4 = scmp.lt.s32.totalorder %s31_s19, %s31_s19 }
   0xb   :  { %p1902_p3 = scmp.ne.s32.totalorder %s31_s19, %s1901_s29  ;;  %p1907_p5 = scmp.lt.s32.totalorder %s1901_s29, %s1901_s29 }
   0xd   :  { %p1908_p6 = por %p1907_p5, %p1906_p4 }
   0xf   :  { %p1909_p7 = pnand %p1908_p6, %p1902_p3 }
  0x11   :  { %1912 = shalt.err (!%p1909_p7)
}
  0x12   :  { %s1987_s30 = smov 256   ;;  %s1988_s6 = smov 16  }
  0x13   :  { %36 = dma.hbm_to_vmem [thread:$0]  %s2087_s1, 16384, %s31_s19, [#allocation6], %s1987_s30, %s1987_s30, %s1988_s6  }
  0x14   :  { %s1913_s11 = scalar_lea.hbm %s2086_s0, 512 }
  0x15   :  { %p1914_p8 = scmp.ne.s32.totalorder %s2086_s0, %s1913_s11  ;;  %p1917_p9 = scmp.lt.u32.totalorder %s1913_s11, %s2086_s0 }
  0x17   :  { %p1919_p10 = pnand %p1917_p9, %p1914_p8 }
  0x19   :  { %1922 = shalt.err (!%p1919_p10)
}
  0x1a   :  { %s1923_s16 = scalar_lea.vmem %s2025_s21, 512  ;;  %p1928_p12 = scmp.lt.s32.totalorder %s2025_s21, %s2025_s21 }
  0x1b   :  { %p1924_p11 = scmp.ne.s32.totalorder %s2025_s21, %s1923_s16  ;;  %p1929_p13 = scmp.lt.s32.totalorder %s1923_s16, %s1923_s16 }
  0x1d   :  { %p1930_p0 = por %p1929_p13, %p1928_p12 }
  0x1f   :  { %p1931_p1 = pnand %p1930_p0, %p1924_p11 }
  0x21   :  { %1934 = shalt.err (!%p1931_p1)
}
  0x22   :  { %24 = dma.hbm_to_vmem [thread:$0]  %s2086_s0, 512, %s2025_s21, [#allocation3], %s1987_s30, %s1987_s30, %s1988_s6  }
  0x23   :  { %s1989_s18 = smov [#allocation7]   ;;  %s1935_s23 = scalar_lea.hbm %s2089_s3, 4096 }
  0x24   :  { %s44_s19 = sshll.u32 %s1989_s18, 4  ;;  %p1936_p2 = scmp.ne.s32.totalorder %s2089_s3, %s1935_s23  ;;  %s45_s19 = int_to_ptr.vmem [resolvable:$true] %s44_s19 }
  0x25   :  { %p1939_p3 = scmp.lt.u32.totalorder %s1935_s23, %s2089_s3 }
  0x27   :  { %p1941_p4 = pnand %p1939_p3, %p1936_p2 }
  0x29   :  { %1944 = shalt.err (!%p1941_p4)
}
  0x2a   :  { %s1945_s28 = scalar_lea.vmem %s45_s19, 4096  ;;  %p1950_p6 = scmp.lt.s32.totalorder %s45_s19, %s45_s19 }
  0x2b   :  { %p1946_p5 = scmp.ne.s32.totalorder %s45_s19, %s1945_s28  ;;  %p1951_p7 = scmp.lt.s32.totalorder %s1945_s28, %s1945_s28 }
  0x2d   :  { %p1952_p8 = por %p1951_p7, %p1950_p6 }
  0x2f   :  { %p1953_p9 = pnand %p1952_p8, %p1946_p5 }
  0x31   :  { %1956 = shalt.err (!%p1953_p9)
}
  0x32   :  { %s1990_s0 = smov 64   ;;  %s1991_s21 = smov 4  }
  0x33   :  { %50 = dma.hbm_to_vmem [thread:$0]  %s2089_s3, 4096, %s45_s19, [#allocation6], %s1990_s0, %s1990_s0, %s1991_s21  }
  0x34   :  { %1979 = dma.done.wait [#allocation3], 512  }
  0x35   :  { %1980 = vsyncadd [#allocation3], 4294966784 }
  0x36   :  { %1981 = dma.done.wait [#allocation6], 20480  }
  0x37   :  { %1982 = vsyncadd [#allocation6], 4294946816  ;;  %v1661_v0 = vld [vmem:[#allocation5 + $0x4] ss:$16 sps:$4 sm:$0xff]   ;;  %v1663_v1 = vld [vmem:[#allocation5 + $0xc] ss:$16 sps:$4 sm:$0xff]  }
  0x38   :  { %877 = vmatprep.subr.bf16.mxu0 %v1661_v0  ;;  %v1665_v2 = vld [vmem:[#allocation5] ss:$16 sps:$4 sm:$0xff]   ;;  %v1666_v3 = vld [vmem:[#allocation5 + $0x8] ss:$16 sps:$4 sm:$0xff]   ;;  %963 = vmatprep.subr.bf16.mxu1 %v1663_v1  ;;  %v1667_v4 = vld [vmem:[#allocation5 + $0x24] ss:$16 sps:$4 sm:$0xff]  }
  0x39   :  { %878 = vmatpush1.bf16.msra.mxu0 %v1665_v2  ;;  %964 = vmatpush1.bf16.msra.mxu1 %v1666_v3  ;;  %v1669_v5 = vld [vmem:[#allocation5 + $0x2c] ss:$16 sps:$4 sm:$0xff]   ;;  %v1671_v6 = vld [vmem:[#allocation5 + $0x20] ss:$16 sps:$4 sm:$0xff]   ;;  %v1672_v7 = vld [vmem:[#allocation5 + $0x28] ss:$16 sps:$4 sm:$0xff]  }
  0x3a   :  { %879 = vmatprep.subr.bf16.mxu0 %v1667_v4  ;;  %965 = vmatprep.subr.bf16.mxu1 %v1669_v5  ;;  %v1673_v8 = vld [vmem:[#allocation5 + $0x44] ss:$16 sps:$4 sm:$0xff]   ;;  %v1675_v9 = vld [vmem:[#allocation5 + $0x4c] ss:$16 sps:$4 sm:$0xff]   ;;  %v1677_v10 = vld [vmem:[#allocation5 + $0x40] ss:$16 sps:$4 sm:$0xff]  }
  0x3b   :  { %v1678_v11 = vld [vmem:[#allocation5 + $0x48] ss:$16 sps:$4 sm:$0xff]   ;;  %v1679_v12 = vld [vmem:[#allocation5 + $0x64] ss:$16 sps:$4 sm:$0xff]   ;;  %v1681_v13 = vld [vmem:[#allocation5 + $0x6c] ss:$16 sps:$4 sm:$0xff]  }
  0x3c   :  { %v1683_v14 = vld [vmem:[#allocation5 + $0x60] ss:$16 sps:$4 sm:$0xff]   ;;  %v1684_v15 = vld [vmem:[#allocation5 + $0x68] ss:$16 sps:$4 sm:$0xff]   ;;  %v1685_v16 = vld [vmem:[#allocation5 + $0x84] ss:$16 sps:$4 sm:$0xff]  }
  0x3d   :  { %880 = vmatpush1.bf16.msra.mxu0 %v1671_v6  ;;  %966 = vmatpush1.bf16.msra.mxu1 %v1672_v7  ;;  %v1687_v17 = vld [vmem:[#allocation5 + $0x8c] ss:$16 sps:$4 sm:$0xff]   ;;  %v1689_v18 = vld [vmem:[#allocation5 + $0x80] ss:$16 sps:$4 sm:$0xff]   ;;  %v1690_v19 = vld [vmem:[#allocation5 + $0x88] ss:$16 sps:$4 sm:$0xff]  }
  0x3e   :  { %881 = vmatprep.subr.bf16.mxu0 %v1673_v8  ;;  %967 = vmatprep.subr.bf16.mxu1 %v1675_v9  ;;  %v1691_v20 = vld [vmem:[#allocation5 + $0xa4] ss:$16 sps:$4 sm:$0xff]   ;;  %v1693_v21 = vld [vmem:[#allocation5 + $0xac] ss:$16 sps:$4 sm:$0xff]   ;;  %v1695_v22 = vld [vmem:[#allocation5 + $0xa0] ss:$16 sps:$4 sm:$0xff]  }
  0x3f   :  { %v1696_v23 = vld [vmem:[#allocation5 + $0xa8] ss:$16 sps:$4 sm:$0xff]   ;;  %v1697_v24 = vld [vmem:[#allocation5 + $0xc4] ss:$16 sps:$4 sm:$0xff]   ;;  %v1699_v25 = vld [vmem:[#allocation5 + $0xcc] ss:$16 sps:$4 sm:$0xff]  }
  0x40   :  { %v1701_v26 = vld [vmem:[#allocation5 + $0xc0] ss:$16 sps:$4 sm:$0xff]   ;;  %v1702_v27 = vld [vmem:[#allocation5 + $0xc8] ss:$16 sps:$4 sm:$0xff]   ;;  %v1703_v28 = vld [vmem:[#allocation5 + $0xe4] ss:$16 sps:$4 sm:$0xff]  }
  0x41   :  { %882 = vmatpush1.bf16.msra.mxu0 %v1677_v10  ;;  %968 = vmatpush1.bf16.msra.mxu1 %v1678_v11  ;;  %v1705_v29 = vld [vmem:[#allocation5 + $0xec] ss:$16 sps:$4 sm:$0xff]   ;;  %v1707_v30 = vld [vmem:[#allocation5 + $0xe0] ss:$16 sps:$4 sm:$0xff]   ;;  %v1708_v31 = vld [vmem:[#allocation5 + $0xe8] ss:$16 sps:$4 sm:$0xff]  }
  0x42   :  { %883 = vmatprep.subr.bf16.mxu0 %v1679_v12  ;;  %969 = vmatprep.subr.bf16.mxu1 %v1681_v13  ;;  %v1709_v32 = vld [vmem:[#allocation5 + $0x104] ss:$16 sps:$4 sm:$0xff]   ;;  %v1711_v33 = vld [vmem:[#allocation5 + $0x10c] ss:$16 sps:$4 sm:$0xff]   ;;  %v1713_v34 = vld [vmem:[#allocation5 + $0x100] ss:$16 sps:$4 sm:$0xff]  }
  0x43   :  { %v1714_v35 = vld [vmem:[#allocation5 + $0x108] ss:$16 sps:$4 sm:$0xff]   ;;  %v1715_v36 = vld [vmem:[#allocation5 + $0x124] ss:$16 sps:$4 sm:$0xff]   ;;  %v1717_v37 = vld [vmem:[#allocation5 + $0x12c] ss:$16 sps:$4 sm:$0xff]  }
  0x44   :  { %v1719_v38 = vld [vmem:[#allocation5 + $0x120] ss:$16 sps:$4 sm:$0xff]   ;;  %v1720_v39 = vld [vmem:[#allocation5 + $0x128] ss:$16 sps:$4 sm:$0xff]   ;;  %v1721_v40 = vld [vmem:[#allocation5 + $0x144] ss:$16 sps:$4 sm:$0xff]  }
  0x45   :  { %884 = vmatpush1.bf16.msra.mxu0 %v1683_v14  ;;  %970 = vmatpush1.bf16.msra.mxu1 %v1684_v15  ;;  %v1723_v41 = vld [vmem:[#allocation5 + $0x14c] ss:$16 sps:$4 sm:$0xff]   ;;  %v1725_v42 = vld [vmem:[#allocation5 + $0x140] ss:$16 sps:$4 sm:$0xff]   ;;  %v1726_v43 = vld [vmem:[#allocation5 + $0x148] ss:$16 sps:$4 sm:$0xff]  }
  0x46   :  { %885 = vmatprep.subr.bf16.mxu0 %v1685_v16  ;;  %971 = vmatprep.subr.bf16.mxu1 %v1687_v17  ;;  %v1727_v44 = vld [vmem:[#allocation5 + $0x164] ss:$16 sps:$4 sm:$0xff]   ;;  %v1729_v45 = vld [vmem:[#allocation5 + $0x16c] ss:$16 sps:$4 sm:$0xff]   ;;  %v1731_v46 = vld [vmem:[#allocation5 + $0x160] ss:$16 sps:$4 sm:$0xff]  }
  0x47   :  { %v1732_v47 = vld [vmem:[#allocation5 + $0x168] ss:$16 sps:$4 sm:$0xff]   ;;  %v1759_v48 = vld [vmem:[#allocation2 + $0x4] ss:$16 sps:$4 sm:$0xff]   ;;  %v1735_v50 = vld [vmem:[#allocation5 + $0x18c] ss:$16 sps:$4 sm:$0xff]  }
  0x48   :  { %v1733_v49 = vld [vmem:[#allocation5 + $0x184] ss:$16 sps:$4 sm:$0xff]   ;;  %909 = vmatprep.mubr.bf16.mxu0 %v1759_v48  ;;  %995 = vmatprep.mubr.bf16.mxu1 %v1759_v48  ;;  %v1737_v51 = vld [vmem:[#allocation5 + $0x180] ss:$16 sps:$4 sm:$0xff]   ;;  %v1738_v52 = vld [vmem:[#allocation5 + $0x188] ss:$16 sps:$4 sm:$0xff]  }
  0x49   :  { %886 = vmatpush1.bf16.msra.mxu0 %v1689_v18  ;;  %972 = vmatpush1.bf16.msra.mxu1 %v1690_v19  ;;  %v1739_v53 = vld [vmem:[#allocation5 + $0x1a4] ss:$16 sps:$4 sm:$0xff]   ;;  %v1741_v54 = vld [vmem:[#allocation5 + $0x1ac] ss:$16 sps:$4 sm:$0xff]   ;;  %v1743_v55 = vld [vmem:[#allocation5 + $0x1a0] ss:$16 sps:$4 sm:$0xff]  }
  0x4a   :  { %887 = vmatprep.subr.bf16.mxu0 %v1691_v20  ;;  %973 = vmatprep.subr.bf16.mxu1 %v1693_v21  ;;  %v1744_v56 = vld [vmem:[#allocation5 + $0x1a8] ss:$16 sps:$4 sm:$0xff]   ;;  %v1745_v57 = vld [vmem:[#allocation5 + $0x1c4] ss:$16 sps:$4 sm:$0xff]   ;;  %v1747_v58 = vld [vmem:[#allocation5 + $0x1cc] ss:$16 sps:$4 sm:$0xff]  }
  0x4b   :  { %v1749_v59 = vld [vmem:[#allocation5 + $0x1c0] ss:$16 sps:$4 sm:$0xff]   ;;  %v1750_v60 = vld [vmem:[#allocation5 + $0x1c8] ss:$16 sps:$4 sm:$0xff]   ;;  %v1751_v61 = vld [vmem:[#allocation5 + $0x1e4] ss:$16 sps:$4 sm:$0xff]  }
  0x4c   :  { %v1753_v62 = vld [vmem:[#allocation5 + $0x1ec] ss:$16 sps:$4 sm:$0xff]   ;;  %v1755_v63 = vld [vmem:[#allocation5 + $0x1e0] ss:$16 sps:$4 sm:$0xff]   ;;  %v1756_v0 = vld [vmem:[#allocation5 + $0x1e8] ss:$16 sps:$4 sm:$0xff]  }
  0x4d   :  { %888 = vmatpush1.bf16.msra.mxu0 %v1695_v22  ;;  %974 = vmatpush1.bf16.msra.mxu1 %v1696_v23  ;;  %v1762_v1 = vld [vmem:[#allocation5 + $0x204] ss:$16 sps:$4 sm:$0xff]   ;;  %v1765_v2 = vld [vmem:[#allocation5 + $0x20c] ss:$16 sps:$4 sm:$0xff]   ;;  %v1757_v3 = vld [vmem:[#allocation2] ss:$16 sps:$4 sm:$0xff]  }
  0x4e   :  { %889 = vmatprep.subr.bf16.mxu0 %v1697_v24  ;;  %975 = vmatprep.subr.bf16.mxu1 %v1699_v25  ;;  %v1760_v4 = vld [vmem:[#allocation5 + $0x200] ss:$16 sps:$4 sm:$0xff]   ;;  %v1763_v5 = vld [vmem:[#allocation5 + $0x208] ss:$16 sps:$4 sm:$0xff]   ;;  %v1768_v6 = vld [vmem:[#allocation5 + $0x224] ss:$16 sps:$4 sm:$0xff]  }
  0x4f   :  { %v1771_v7 = vld [vmem:[#allocation5 + $0x22c] ss:$16 sps:$4 sm:$0xff]   ;;  %v1766_v8 = vld [vmem:[#allocation5 + $0x220] ss:$16 sps:$4 sm:$0xff]   ;;  %v1769_v9 = vld [vmem:[#allocation5 + $0x228] ss:$16 sps:$4 sm:$0xff]  }
  0x50   :  { %v1774_v10 = vld [vmem:[#allocation5 + $0x244] ss:$16 sps:$4 sm:$0xff]   ;;  %v1777_v11 = vld [vmem:[#allocation5 + $0x24c] ss:$16 sps:$4 sm:$0xff]   ;;  %v1772_v12 = vld [vmem:[#allocation5 + $0x240] ss:$16 sps:$4 sm:$0xff]  }
  0x51   :  { %890 = vmatpush1.bf16.msra.mxu0 %v1701_v26  ;;  %976 = vmatpush1.bf16.msra.mxu1 %v1702_v27  ;;  %v1775_v13 = vld [vmem:[#allocation5 + $0x248] ss:$16 sps:$4 sm:$0xff]   ;;  %v1780_v14 = vld [vmem:[#allocation5 + $0x264] ss:$16 sps:$4 sm:$0xff]   ;;  %v1783_v15 = vld [vmem:[#allocation5 + $0x26c] ss:$16 sps:$4 sm:$0xff]  }
  0x52   :  { %891 = vmatprep.subr.bf16.mxu0 %v1703_v28  ;;  %977 = vmatprep.subr.bf16.mxu1 %v1705_v29  ;;  %v1778_v16 = vld [vmem:[#allocation5 + $0x260] ss:$16 sps:$4 sm:$0xff]   ;;  %v1781_v17 = vld [vmem:[#allocation5 + $0x268] ss:$16 sps:$4 sm:$0xff]   ;;  %v1786_v18 = vld [vmem:[#allocation5 + $0x284] ss:$16 sps:$4 sm:$0xff]  }
  0x53   :  { %v1789_v19 = vld [vmem:[#allocation5 + $0x28c] ss:$16 sps:$4 sm:$0xff]   ;;  %v1784_v20 = vld [vmem:[#allocation5 + $0x280] ss:$16 sps:$4 sm:$0xff]   ;;  %v1787_v21 = vld [vmem:[#allocation5 + $0x288] ss:$16 sps:$4 sm:$0xff]  }
  0x54   :  { %v1792_v22 = vld [vmem:[#allocation5 + $0x2a4] ss:$16 sps:$4 sm:$0xff]   ;;  %v1795_v23 = vld [vmem:[#allocation5 + $0x2ac] ss:$16 sps:$4 sm:$0xff]   ;;  %v1790_v24 = vld [vmem:[#allocation5 + $0x2a0] ss:$16 sps:$4 sm:$0xff]  }
  0x55   :  { %892 = vmatpush1.bf16.msra.mxu0 %v1707_v30  ;;  %978 = vmatpush1.bf16.msra.mxu1 %v1708_v31  ;;  %v1793_v25 = vld [vmem:[#allocation5 + $0x2a8] ss:$16 sps:$4 sm:$0xff]   ;;  %v1798_v26 = vld [vmem:[#allocation5 + $0x2c4] ss:$16 sps:$4 sm:$0xff]   ;;  %v1801_v27 = vld [vmem:[#allocation5 + $0x2cc] ss:$16 sps:$4 sm:$0xff]  }
  0x56   :  { %893 = vmatprep.subr.bf16.mxu0 %v1709_v32  ;;  %979 = vmatprep.subr.bf16.mxu1 %v1711_v33  ;;  %v1796_v28 = vld [vmem:[#allocation5 + $0x2c0] ss:$16 sps:$4 sm:$0xff]   ;;  %v1799_v29 = vld [vmem:[#allocation5 + $0x2c8] ss:$16 sps:$4 sm:$0xff]   ;;  %v1858_v30 = vld [vmem:[#allocation2 + $0xc] ss:$16 sps:$4 sm:$0xff]  }
  0x57   :  { %v1804_v31 = vld [vmem:[#allocation5 + $0x2e4] ss:$16 sps:$4 sm:$0xff]   ;;  %v1807_v32 = vld [vmem:[#allocation5 + $0x2ec] ss:$16 sps:$4 sm:$0xff]   ;;  %v1802_v33 = vld [vmem:[#allocation5 + $0x2e0] ss:$16 sps:$4 sm:$0xff]  }
  0x58   :  { %v1831_v48 = vld [vmem:[#allocation5 + $0x36c] ss:$16 sps:$4 sm:$0xff]   ;;  %s1992_s8 = smov [#allocation8]  }
  0x59   :  { %894 = vmatpush1.bf16.msra.mxu0 %v1713_v34  ;;  %980 = vmatpush1.bf16.msra.mxu1 %v1714_v35  ;;  %v1805_v34 = vld [vmem:[#allocation5 + $0x2e8] ss:$16 sps:$4 sm:$0xff]   ;;  %v1810_v35 = vld [vmem:[#allocation5 + $0x304] ss:$16 sps:$4 sm:$0xff]   ;;  %s1413_s9 = sshll.u32 %s1992_s8, 4  ;;  %s1414_s9 = int_to_ptr.vmem [resolvable:$true] %s1413_s9 }
  0x5a   :  { %895 = vmatprep.subr.bf16.mxu0 %v1715_v36  ;;  %981 = vmatprep.subr.bf16.mxu1 %v1717_v37  ;;  %v1813_v36 = vld [vmem:[#allocation5 + $0x30c] ss:$16 sps:$4 sm:$0xff]   ;;  %v1808_v37 = vld [vmem:[#allocation5 + $0x300] ss:$16 sps:$4 sm:$0xff]   ;;  %p1962_p11 = scmp.lt.s32.totalorder %s1414_s9, %s1414_s9 }
  0x5d   :  { %896 = vmatpush1.bf16.msra.mxu0 %v1719_v38  ;;  %982 = vmatpush1.bf16.msra.mxu1 %v1720_v39  ;;  %v1811_v38 = vld [vmem:[#allocation5 + $0x308] ss:$16 sps:$4 sm:$0xff]   ;;  %v1816_v39 = vld [vmem:[#allocation5 + $0x324] ss:$16 sps:$4 sm:$0xff]  }
  0x5e   :  { %897 = vmatprep.subr.bf16.mxu0 %v1721_v40  ;;  %983 = vmatprep.subr.bf16.mxu1 %v1723_v41  ;;  %v1819_v40 = vld [vmem:[#allocation5 + $0x32c] ss:$16 sps:$4 sm:$0xff]   ;;  %v1814_v41 = vld [vmem:[#allocation5 + $0x320] ss:$16 sps:$4 sm:$0xff]  }
  0x61   :  { %898 = vmatpush1.bf16.msra.mxu0 %v1725_v42  ;;  %984 = vmatpush1.bf16.msra.mxu1 %v1726_v43  ;;  %v1817_v42 = vld [vmem:[#allocation5 + $0x328] ss:$16 sps:$4 sm:$0xff]   ;;  %v1822_v43 = vld [vmem:[#allocation5 + $0x344] ss:$16 sps:$4 sm:$0xff]  }
  0x62   :  { %899 = vmatprep.subr.bf16.mxu0 %v1727_v44  ;;  %985 = vmatprep.subr.bf16.mxu1 %v1729_v45  ;;  %v1825_v44 = vld [vmem:[#allocation5 + $0x34c] ss:$16 sps:$4 sm:$0xff]   ;;  %v1820_v45 = vld [vmem:[#allocation5 + $0x340] ss:$16 sps:$4 sm:$0xff]  }
  0x65   :  { %900 = vmatpush1.bf16.msra.mxu0 %v1731_v46  ;;  %986 = vmatpush1.bf16.msra.mxu1 %v1732_v47  ;;  %v1823_v46 = vld [vmem:[#allocation5 + $0x348] ss:$16 sps:$4 sm:$0xff]   ;;  %v1828_v47 = vld [vmem:[#allocation5 + $0x364] ss:$16 sps:$4 sm:$0xff]  }
  0x66   :  { %901 = vmatprep.subr.bf16.mxu0 %v1733_v49  ;;  %987 = vmatprep.subr.bf16.mxu1 %v1735_v50  ;;  %v1826_v49 = vld [vmem:[#allocation5 + $0x360] ss:$16 sps:$4 sm:$0xff]   ;;  %v1829_v50 = vld [vmem:[#allocation5 + $0x368] ss:$16 sps:$4 sm:$0xff]  }
  0x69   :  { %902 = vmatpush1.bf16.msra.mxu0 %v1737_v51  ;;  %988 = vmatpush1.bf16.msra.mxu1 %v1738_v52  ;;  %v1834_v51 = vld [vmem:[#allocation5 + $0x384] ss:$16 sps:$4 sm:$0xff]   ;;  %v1837_v52 = vld [vmem:[#allocation5 + $0x38c] ss:$16 sps:$4 sm:$0xff]  }
  0x6a   :  { %903 = vmatprep.subr.bf16.mxu0 %v1739_v53  ;;  %989 = vmatprep.subr.bf16.mxu1 %v1741_v54  ;;  %v1832_v53 = vld [vmem:[#allocation5 + $0x380] ss:$16 sps:$4 sm:$0xff]   ;;  %v1835_v54 = vld [vmem:[#allocation5 + $0x388] ss:$16 sps:$4 sm:$0xff]  }
  0x6d   :  { %904 = vmatpush1.bf16.msra.mxu0 %v1743_v55  ;;  %990 = vmatpush1.bf16.msra.mxu1 %v1744_v56  ;;  %v1840_v55 = vld [vmem:[#allocation5 + $0x3a4] ss:$16 sps:$4 sm:$0xff]   ;;  %v1843_v56 = vld [vmem:[#allocation5 + $0x3ac] ss:$16 sps:$4 sm:$0xff]  }
  0x6e   :  { %905 = vmatprep.subr.bf16.mxu0 %v1745_v57  ;;  %991 = vmatprep.subr.bf16.mxu1 %v1747_v58  ;;  %v1838_v57 = vld [vmem:[#allocation5 + $0x3a0] ss:$16 sps:$4 sm:$0xff]   ;;  %v1841_v58 = vld [vmem:[#allocation5 + $0x3a8] ss:$16 sps:$4 sm:$0xff]  }
  0x71   :  { %906 = vmatpush1.bf16.msra.mxu0 %v1749_v59  ;;  %992 = vmatpush1.bf16.msra.mxu1 %v1750_v60  ;;  %v1846_v59 = vld [vmem:[#allocation5 + $0x3c4] ss:$16 sps:$4 sm:$0xff]   ;;  %v1849_v60 = vld [vmem:[#allocation5 + $0x3cc] ss:$16 sps:$4 sm:$0xff]  }
  0x72   :  { %907 = vmatprep.subr.bf16.mxu0 %v1751_v61  ;;  %993 = vmatprep.subr.bf16.mxu1 %v1753_v62  ;;  %v1844_v61 = vld [vmem:[#allocation5 + $0x3c0] ss:$16 sps:$4 sm:$0xff]   ;;  %v1847_v62 = vld [vmem:[#allocation5 + $0x3c8] ss:$16 sps:$4 sm:$0xff]  }
  0x75   :  { %908 = vmatpush1.bf16.msra.mxu0 %v1755_v63  ;;  %994 = vmatpush1.bf16.msra.mxu1 %v1756_v0  ;;  %v1852_v63 = vld [vmem:[#allocation5 + $0x3e4] ss:$16 sps:$4 sm:$0xff]   ;;  %v1855_v0 = vld [vmem:[#allocation5 + $0x3ec] ss:$16 sps:$4 sm:$0xff]  }
  0x76   :  { %920 = vmatprep.subr.bf16.mxu0 %v1762_v1  ;;  %1006 = vmatprep.subr.bf16.mxu1 %v1765_v2  ;;  %v1850_v1 = vld [vmem:[#allocation5 + $0x3e0] ss:$16 sps:$4 sm:$0xff]   ;;  %v1853_v2 = vld [vmem:[#allocation5 + $0x3e8] ss:$16 sps:$4 sm:$0xff]  }
  0x78   :  { %910 = vmatmul.mubr.bf16.vlgmr.msra.gmra.mrb[0].mxu0 %v1757_v3  ;;  %996 = vmatmul.mubr.bf16.vlgmr.msra.gmra.mrb[0].mxu1 %v1757_v3  ;;  %v1859_v3 = vld [vmem:[#allocation7 + $0x40] sm:$0xff]  }
  0x79   :  { %921 = vmatpush1.bf16.msra.mxu0 %v1760_v4  ;;  %1007 = vmatpush1.bf16.msra.mxu1 %v1763_v5  ;;  %v1860_v4 = vld [vmem:[#allocation7 + $0xc0] sm:$0xff]   ;;  %v1856_v5 = vld [vmem:[#allocation2 + $0x8] ss:$16 sps:$4 sm:$0xff]  }
  0x7a   :  { %922 = vmatprep.subr.bf16.mxu0 %v1768_v6  ;;  %1008 = vmatprep.subr.bf16.mxu1 %v1771_v7  ;;  %v1861_v6 = vld [vmem:[#allocation7] sm:$0xff]  }
  0x7b   :  { %952 = vmatprep.mubr.bf16.mxu0 %v1858_v30  ;;  %1038 = vmatprep.mubr.bf16.mxu1 %v1858_v30  ;;  %v1862_v7 = vld [vmem:[#allocation7 + $0x80] sm:$0xff]   ;;  %v1885_v30 = vld [vmem:[#allocation7 + $0x30] sm:$0xff]  }
  0x7d   :  { %923 = vmatpush1.bf16.msra.mxu0 %v1766_v8  ;;  %1009 = vmatpush1.bf16.msra.mxu1 %v1769_v9  ;;  %v1863_v8 = vld [vmem:[#allocation7 + $0x48] sm:$0xff]  }
  0x7e   :  { %924 = vmatprep.subr.bf16.mxu0 %v1774_v10  ;;  %1010 = vmatprep.subr.bf16.mxu1 %v1777_v11  ;;  %v1864_v9 = vld [vmem:[#allocation7 + $0xc8] sm:$0xff]  }
  0x7f   :  { %v1865_v10 = vld [vmem:[#allocation7 + $0x8] sm:$0xff]  }
  0x80   :  { %v1866_v11 = vld [vmem:[#allocation7 + $0x88] sm:$0xff]  }
  0x81   :  { %925 = vmatpush1.bf16.msra.mxu0 %v1772_v12  ;;  %1011 = vmatpush1.bf16.msra.mxu1 %v1775_v13  ;;  %v1867_v12 = vld [vmem:[#allocation7 + $0x50] sm:$0xff]  }
  0x82   :  { %926 = vmatprep.subr.bf16.mxu0 %v1780_v14  ;;  %1012 = vmatprep.subr.bf16.mxu1 %v1783_v15  ;;  %v1868_v13 = vld [vmem:[#allocation7 + $0xd0] sm:$0xff]  }
  0x83   :  { %v1869_v14 = vld [vmem:[#allocation7 + $0x10] sm:$0xff]  }
  0x84   :  { %v1870_v15 = vld [vmem:[#allocation7 + $0x90] sm:$0xff]  }
  0x85   :  { %927 = vmatpush1.bf16.msra.mxu0 %v1778_v16  ;;  %1013 = vmatpush1.bf16.msra.mxu1 %v1781_v17  ;;  %v1871_v16 = vld [vmem:[#allocation7 + $0x58] sm:$0xff]  }
  0x86   :  { %928 = vmatprep.subr.bf16.mxu0 %v1786_v18  ;;  %1014 = vmatprep.subr.bf16.mxu1 %v1789_v19  ;;  %v1872_v17 = vld [vmem:[#allocation7 + $0xd8] sm:$0xff]  }
  0x87   :  { %v1873_v18 = vld [vmem:[#allocation7 + $0x18] sm:$0xff]  }
  0x88   :  { %v1874_v19 = vld [vmem:[#allocation7 + $0x98] sm:$0xff]  }
  0x89   :  { %929 = vmatpush1.bf16.msra.mxu0 %v1784_v20  ;;  %1015 = vmatpush1.bf16.msra.mxu1 %v1787_v21  ;;  %v1875_v20 = vld [vmem:[#allocation7 + $0x60] sm:$0xff]  }
  0x8a   :  { %930 = vmatprep.subr.bf16.mxu0 %v1792_v22  ;;  %1016 = vmatprep.subr.bf16.mxu1 %v1795_v23  ;;  %v1876_v21 = vld [vmem:[#allocation7 + $0xe0] sm:$0xff]  }
  0x8b   :  { %v1877_v22 = vld [vmem:[#allocation7 + $0x20] sm:$0xff]  }
  0x8c   :  { %v1878_v23 = vld [vmem:[#allocation7 + $0xa0] sm:$0xff]  }
  0x8d   :  { %931 = vmatpush1.bf16.msra.mxu0 %v1790_v24  ;;  %1017 = vmatpush1.bf16.msra.mxu1 %v1793_v25  ;;  %v1879_v24 = vld [vmem:[#allocation7 + $0x68] sm:$0xff]  }
  0x8e   :  { %932 = vmatprep.subr.bf16.mxu0 %v1798_v26  ;;  %1018 = vmatprep.subr.bf16.mxu1 %v1801_v27  ;;  %v1880_v25 = vld [vmem:[#allocation7 + $0xe8] sm:$0xff]  }
  0x8f   :  { %v1881_v26 = vld [vmem:[#allocation7 + $0x28] sm:$0xff]  }
  0x90   :  { %v1882_v27 = vld [vmem:[#allocation7 + $0xa8] sm:$0xff]  }
  0x91   :  { %933 = vmatpush1.bf16.msra.mxu0 %v1796_v28  ;;  %1019 = vmatpush1.bf16.msra.mxu1 %v1799_v29  ;;  %v1883_v28 = vld [vmem:[#allocation7 + $0x70] sm:$0xff]  }
  0x92   :  { %934 = vmatprep.subr.bf16.mxu0 %v1804_v31  ;;  %1020 = vmatprep.subr.bf16.mxu1 %v1807_v32  ;;  %v1884_v29 = vld [vmem:[#allocation7 + $0xf0] sm:$0xff]   ;;  %v1887_v32 = vld [vmem:[#allocation7 + $0x78] sm:$0xff]  }
  0x93   :  { %v1886_v31 = vld [vmem:[#allocation7 + $0xb0] sm:$0xff]  }
  0x95   :  { %935 = vmatpush1.bf16.msra.mxu0 %v1802_v33  ;;  %1021 = vmatpush1.bf16.msra.mxu1 %v1805_v34  ;;  %v1888_v33 = vld [vmem:[#allocation7 + $0xf8] sm:$0xff]  }
  0x96   :  { %936 = vmatprep.subr.bf16.mxu0 %v1810_v35  ;;  %1022 = vmatprep.subr.bf16.mxu1 %v1813_v36  ;;  %v1889_v34 = vld [vmem:[#allocation7 + $0x38] sm:$0xff]   ;;  %v197_v36 = vlaneseq }
  0x97   :  { %v1890_v35 = vld [vmem:[#allocation7 + $0xb8] sm:$0xff]  }
  0x99   :  { %937 = vmatpush1.bf16.msra.mxu0 %v1808_v37  ;;  %1023 = vmatpush1.bf16.msra.mxu1 %v1811_v38  ;;  %v198_v37 = vshrl.u32 %v197_v36, 7 }
  0x9a   :  { %938 = vmatprep.subr.bf16.mxu0 %v1816_v39  ;;  %1024 = vmatprep.subr.bf16.mxu1 %v1819_v40  ;;  %v195_v40 = vld [vmem:[%s2088_s2] sm:$0xf] }
  0x9b   :  { %v199_v38 = vsub.s32 0, %v198_v37  ;;  %v207_v39 = vsub.s32 2, %v198_v37 }
  0x9d   :  { %939 = vmatpush1.bf16.msra.mxu0 %v1814_v41  ;;  %1025 = vmatpush1.bf16.msra.mxu1 %v1817_v42  ;;  %v203_v41 = vsub.s32 1, %v198_v37  ;;  %v211_v42 = vsub.s32 3, %v198_v37 }
  0x9e   :  { %940 = vmatprep.subr.bf16.mxu0 %v1822_v43  ;;  %1026 = vmatprep.subr.bf16.mxu1 %v1825_v44  ;;  %v200_v43 = vrot.slane %v195_v40, %v199_v38  ;;  %v208_v44 = vrot.slane %v195_v40, %v207_v39 }
  0xa1   :  { %941 = vmatpush1.bf16.msra.mxu0 %v1820_v45  ;;  %1027 = vmatpush1.bf16.msra.mxu1 %v1823_v46  ;;  %v204_v45 = vrot.slane %v195_v40, %v203_v41  ;;  %v212_v46 = vrot.slane %v195_v40, %v211_v42 }
  0xa2   :  { %942 = vmatprep.subr.bf16.mxu0 %v1828_v47  ;;  %1028 = vmatprep.subr.bf16.mxu1 %v1831_v48 }
  0xa5   :  { %943 = vmatpush1.bf16.msra.mxu0 %v1826_v49  ;;  %1029 = vmatpush1.bf16.msra.mxu1 %v1829_v50 }
  0xa6   :  { %944 = vmatprep.subr.bf16.mxu0 %v1834_v51  ;;  %1030 = vmatprep.subr.bf16.mxu1 %v1837_v52 }
  0xa9   :  { %945 = vmatpush1.bf16.msra.mxu0 %v1832_v53  ;;  %1031 = vmatpush1.bf16.msra.mxu1 %v1835_v54 }
  0xaa   :  { %946 = vmatprep.subr.bf16.mxu0 %v1840_v55  ;;  %1032 = vmatprep.subr.bf16.mxu1 %v1843_v56 }
  0xad   :  { %947 = vmatpush1.bf16.msra.mxu0 %v1838_v57  ;;  %1033 = vmatpush1.bf16.msra.mxu1 %v1841_v58 }
  0xae   :  { %948 = vmatprep.subr.bf16.mxu0 %v1846_v59  ;;  %1034 = vmatprep.subr.bf16.mxu1 %v1849_v60 }
  0xb1   :  { %949 = vmatpush1.bf16.msra.mxu0 %v1844_v61  ;;  %1035 = vmatpush1.bf16.msra.mxu1 %v1847_v62 }
  0xb2   :  { %950 = vmatprep.subr.bf16.mxu0 %v1852_v63  ;;  %1036 = vmatprep.subr.bf16.mxu1 %v1855_v0 }
  0xb5   :  { %951 = vmatpush1.bf16.msra.mxu0 %v1850_v1  ;;  %1037 = vmatpush1.bf16.msra.mxu1 %v1853_v2 }
  0xb6   :  { %1591 = vmatprep.subr.bf16.mxu0 %v1859_v3  ;;  %1613 = vmatprep.subr.bf16.mxu1 %v1860_v4 }
  0xb8   :  { %953 = vmatmul.mubr.bf16.vlgmr.msra.gmra.mrb[0].mxu0 %v1856_v5  ;;  %1039 = vmatmul.mubr.bf16.vlgmr.msra.gmra.mrb[0].mxu1 %v1856_v5 }
  0xb9   :  { %1592 = vmatpush3.bf16.msra.mxu0 %v1861_v6  ;;  %1614 = vmatpush3.bf16.msra.mxu1 %v1862_v7 }
  0xba   :  { %1593 = vmatprep.subr.bf16.mxu0 %v1863_v8  ;;  %1615 = vmatprep.subr.bf16.mxu1 %v1864_v9 }
  0xbd   :  { %1594 = vmatpush3.bf16.msra.mxu0 %v1865_v10  ;;  %1616 = vmatpush3.bf16.msra.mxu1 %v1866_v11 }
  0xbe   :  { %1595 = vmatprep.subr.bf16.mxu0 %v1867_v12  ;;  %1617 = vmatprep.subr.bf16.mxu1 %v1868_v13  ;;  %v1558_v13 = vld [vmem:[%s2090_s4] ss:$0 sm:$0xff]  ;;  %s1957_s4 = scalar_lea.vmem %s1414_s9, 256 }
  0xbf   :  { %p1958_p10 = scmp.ne.s32.totalorder %s1414_s9, %s1957_s4  ;;  %p1963_p12 = scmp.lt.s32.totalorder %s1957_s4, %s1957_s4 }
  0xc1   :  { %1596 = vmatpush3.bf16.msra.mxu0 %v1869_v14  ;;  %1618 = vmatpush3.bf16.msra.mxu1 %v1870_v15  ;;  %p1964_p13 = por %p1963_p12, %p1962_p11 }
  0xc2   :  { %1597 = vmatprep.subr.bf16.mxu0 %v1871_v16  ;;  %1619 = vmatprep.subr.bf16.mxu1 %v1872_v17 }
  0xc3   :  { %p1965_p0 = pnand %p1964_p13, %p1958_p10 }
  0xc5   :  { %1598 = vmatpush3.bf16.msra.mxu0 %v1873_v18  ;;  %1620 = vmatpush3.bf16.msra.mxu1 %v1874_v19 }
  0xc6   :  { %1599 = vmatprep.subr.bf16.mxu0 %v1875_v20  ;;  %1621 = vmatprep.subr.bf16.mxu1 %v1876_v21 }
  0xc9   :  { %1600 = vmatpush3.bf16.msra.mxu0 %v1877_v22  ;;  %1622 = vmatpush3.bf16.msra.mxu1 %v1878_v23 }
  0xca   :  { %1601 = vmatprep.subr.bf16.mxu0 %v1879_v24  ;;  %1623 = vmatprep.subr.bf16.mxu1 %v1880_v25 }
  0xcd   :  { %1602 = vmatpush3.bf16.msra.mxu0 %v1881_v26  ;;  %1624 = vmatpush3.bf16.msra.mxu1 %v1882_v27 }
  0xce   :  { %1603 = vmatprep.subr.bf16.mxu0 %v1883_v28  ;;  %1625 = vmatprep.subr.bf16.mxu1 %v1884_v29 }
  0xd1   :  { %1604 = vmatpush3.bf16.msra.mxu0 %v1885_v30  ;;  %1626 = vmatpush3.bf16.msra.mxu1 %v1886_v31 }
  0xd2   :  { %1605 = vmatprep.subr.bf16.mxu0 %v1887_v32  ;;  %1627 = vmatprep.subr.bf16.mxu1 %v1888_v33 }
  0xd5   :  { %1606 = vmatpush3.bf16.msra.mxu0 %v1889_v34  ;;  %1628 = vmatpush3.bf16.msra.mxu1 %v1890_v35 }
 0x18b   :  { %v954_v47 = vpop.f32.mrb[0].mxu0  ;;  %v1040_v48 = vpop.f32.mrb[0].mxu1 }
 0x18c   :  { %v1635_v49 = vadd.f32 %v954_v47, %v200_v43  ;;  %v1639_v50 = vadd.f32 %v1040_v48, %v208_v44  ;;  %v956_v51 = vpop.f32.mrb[1].mxu0  ;;  %v1042_v52 = vpop.f32.mrb[1].mxu1 }
 0x18d   :  { %v1636_v53 = vadd.f32 %v956_v51, %v204_v45  ;;  %v1640_v54 = vadd.f32 %v1042_v52, %v212_v46  ;;  %v958_v55 = vpop.f32.mrb[2].mxu0  ;;  %v1044_v56 = vpop.f32.mrb[2].mxu1 }
 0x18e   :  { %v1637_v57 = vadd.f32 %v958_v55, %v200_v43  ;;  %v1641_v58 = vadd.f32 %v1044_v56, %v208_v44  ;;  %v960_v59 = vpop.f32.mrb[3].mxu0  ;;  %v1046_v60 = vpop.f32.mrb[3].mxu1  ;;  %v1049_v63 = vmax.f32 %v1635_v49, 0.0  ;;  %v1051_v0 = vmax.f32 %v1639_v50, 0.0 }
 0x18f   :  { %v1638_v61 = vadd.f32 %v960_v59, %v204_v45  ;;  %v1642_v62 = vadd.f32 %v1046_v60, %v212_v46  ;;  %v1050_v3 = vmax.f32 %v1636_v53, 0.0  ;;  %v1052_v4 = vmax.f32 %v1640_v54, 0.0 }
 0x190   :  { %v1053_v1 = vmax.f32 %v1637_v57, 0.0  ;;  %v1055_v2 = vmax.f32 %v1641_v58, 0.0 }
 0x191   :  { %v1054_v5 = vmax.f32 %v1638_v61, 0.0  ;;  %v1056_v6 = vmax.f32 %v1642_v62, 0.0 }
 0x192   :  { %v1057_v7 = vpack.c.bf16 %v1053_v1, %v1049_v63  ;;  %v1059_v8 = vpack.c.bf16 %v1055_v2, %v1051_v0 }
 0x193   :  { %v1058_v9 = vpack.c.bf16 %v1054_v5, %v1050_v3  ;;  %v1060_v10 = vpack.c.bf16 %v1056_v6, %v1052_v4 }
 0x195   :  { %1356 = vmatprep.mubr.bf16.mxu0 %v1058_v9  ;;  %1397 = vmatprep.mubr.bf16.mxu1 %v1060_v10 }
 0x196   :  { %1357 = vmatmul.mubr.bf16.vlgmr.msra.gmra.mrb[4].mxu0 %v1057_v7  ;;  %1398 = vmatmul.mubr.bf16.vlgmr.msra.gmra.mrb[4].mxu1 %v1059_v8 }
 0x269   :  { %v1607_v11 = vpop.f32.mrb[4].mxu0  ;;  %v1629_v12 = vpop.f32.mrb[4].mxu1 }
 0x26a   :  { %v1608_v14 = vpop.f32.mrb[5].mxu0  ;;  %v1630_v15 = vpop.f32.mrb[5].mxu1 }
 0x26b   :  { %v1609_v16 = vadd.f32 %v1608_v14, %v1607_v11  ;;  %v1631_v17 = vadd.f32 %v1630_v15, %v1629_v12  ;;  %v1610_v18 = vpop.f32.mrb[6].mxu0  ;;  %v1632_v19 = vpop.f32.mrb[6].mxu1 }
 0x26c   :  { %v1611_v20 = vpop.f32.mrb[7].mxu0  ;;  %v1633_v21 = vpop.f32.mrb[7].mxu1 }
 0x26d   :  { %v1359_v22 = vadd.f32 %v1609_v16, %v1558_v13  ;;  %v1612_v23 = vadd.f32 %v1611_v20, %v1610_v18  ;;  %v1634_v24 = vadd.f32 %v1633_v21, %v1632_v19 }
 0x26f   :  { %v1400_v25 = vadd.f32 %v1631_v17, %v1359_v22  ;;  %v1362_v26 = vadd.f32 %v1612_v23, %v1558_v13 }
 0x271   :  { %1406 = vst [vmem:[#allocation8] sm:$0xff] %v1400_v25  ;;  %v1403_v27 = vadd.f32 %v1634_v24, %v1362_v26 }
 0x273   :  { %1407 = vst [vmem:[#allocation8 + $0x8] sm:$0xff] %v1403_v27 }
 0x274   :  { %1968 = shalt.err (!%p1965_p0)
}
 0x275   :  { %s1969_s12 = scalar_lea.hbm %s2091_s5, 256 }
 0x276   :  { %p1970_p1 = scmp.ne.s32.totalorder %s2091_s5, %s1969_s12  ;;  %p1973_p2 = scmp.lt.u32.totalorder %s1969_s12, %s2091_s5 }
 0x278   :  { %p1975_p3 = pnand %p1973_p2, %p1970_p1 }
 0x27a   :  { %1978 = shalt.err (!%p1975_p3)
}
 0x27b   :  { %s1993_s1 = smov 128   ;;  %s1994_s17 = smov 8  }
 0x27c   :  { %1419 = dma.vmem_to_hbm [thread:$0]  %s1414_s9, 256, %s2091_s5, [#allocation4], %s1993_s1, %s1993_s1, %s1994_s17  }
 0x27d   :  { %1983 = dma.done.wait [#allocation4], 256  }
 0x27e   :  { %1984 = vsyncadd [#allocation4], 4294967040 }
 0x27f   :  { %1423 = vsyncpa [#allocation3], 1 }
 0x280   :  { %1424 = vsyncpa [#allocation6], 1 }
 0x281   :  { %1425 = vsyncpa [#allocation4], 1 }

</bundles_post_ra>
